<compile_context>
chip_gen: v5e
topology: v5e:2x2
jax: 0.10.0
libtpu: 0.0.40
codegen_flags: <defaults>
</compile_context>

<pallas_src>
import functools

import numpy as np
import jax
import jax.numpy as jnp
from jax.experimental import pallas as pl
from jax.experimental.pallas import tpu as pltpu


def _band_count_matrix(L, kernel_size):
    """Integer-count banded matrix C with (C @ x) / kernel_size equal to
    AvgPool1d(kernel_size, stride=1) applied to x edge-replicated by
    (kernel_size - 1)//2 on both ends (exactly the PyTorch moving_avg block).
    Counts are small integers, hence exactly representable in bfloat16."""
    pad = (kernel_size - 1) // 2
    assert L + 2 * pad - kernel_size + 1 == L, "odd kernels keep length L"
    C = np.zeros((L, L), dtype=np.float32)
    for t in range(L):
        for j in range(kernel_size):
            s = min(max(t + j - pad, 0), L - 1)
            C[t, s] += 1.0
    return C


def _vmem_capacity_bytes():
    """Physical VMEM per TensorCore (128 MiB v5e/v6e, 64 MiB v7x)."""
    try:
        cap = int(getattr(pltpu.get_tpu_info(), "vmem_capacity_bytes", 0))
        if cap > 0:
            return cap
    except Exception:
        pass
    return 64 << 20          # conservative fallback (v7x per-core VMEM)


def _block_vmem_bytes(K, L, Dt, x_elt, a_elt):
    """Per-step VMEM footprint, including pipeline double-buffers and the
    in-kernel temporaries the previous estimate omitted."""
    a_bytes = 2 * K * L * L * a_elt            # banded matrices (double-buffered)
    in_bytes = 2 * L * Dt * x_elt              # input block (double-buffered)
    out_bytes = 2 * 2 * K * L * Dt * x_elt     # res & mean blocks (double-buffered)
    tmp_bytes = L * Dt * (4 + a_elt + 4 + 4)   # x_f32, x cast for dot, f32 acc, mk
    return a_bytes + in_bytes + out_bytes + tmp_bytes + (2 << 20)  # Mosaic headroom


def _choose_d_tile(B, D, K, L, x_elt, a_elt, vmem_budget):
    """Largest lane-dense channel tile that fits the VMEM budget, shrunk (when
    possible) so v7x's two TensorCores both get at least one grid program."""
    cands = []
    if D <= 512 or D % 128 != 0:
        cands.append(D)                         # full channel axis
    for dt in (1024, 512, 256, 128):
        if dt <= D and D % dt == 0 and dt not in cands:
            cands.append(dt)
    fits = [dt for dt in cands
            if _block_vmem_bytes(K, L, dt, x_elt, a_elt) <= vmem_budget]
    pool = fits if fits else cands[-1:]         # best effort if nothing fits
    chosen = pool[0]
    if B * (D // chosen) < 2:                   # keep the second TensorCore busy
        for dt in pool:
            if dt < chosen and B * (D // dt) >= 2:
                chosen = dt
                break
    return chosen


def _decomp_multi_kernel(a_ref, x_ref, res_ref, mean_ref, *, kernel_sizes, dot_dtype):
    # a_ref:    (K, L, L)     banded count matrices, resident across the grid
    # x_ref:    (1, L, Dt)    one (batch, channel-tile) slab of the input
    # res_ref:  (K, 1, L, Dt) seasonal residuals, channels lane-dense
    # mean_ref: (K, 1, L, Dt) moving means, channels lane-dense
    x = x_ref[0]
    x_f32 = x.astype(jnp.float32)
    x_dot = x.astype(dot_dtype)
    for idx, ksize in enumerate(kernel_sizes):             # static unroll over K
        acc = jnp.dot(a_ref[idx], x_dot,
                      preferred_element_type=jnp.float32)  # (L, Dt), f32 MXU acc
        mk = acc * (1.0 / ksize)                           # exact 1/k scale (VPU)
        mean_ref[idx, 0, :, :] = mk.astype(mean_ref.dtype)
        res_ref[idx, 0, :, :] = (x_f32 - mk).astype(res_ref.dtype)


def series_decomp_multi(x, kernel_sizes, *, output_layout="bldk",
                        use_bf16_matmul=True):
    """JAX/Pallas equivalent of PyTorch `series_decomp_multi(kernel_sizes)`.

    x: (B, L, D).  output_layout="bldk" (default) returns (sea, moving_mean)
    each shaped (B, L, D, K), matching the PyTorch module.  "kbld" returns the
    kernel-native (K, B, L, D) layout with no extra HBM pass (preferred when
    the caller immediately reduces over K)."""
    kernel_sizes = tuple(int(k) for k in kernel_sizes)
    if any(k % 2 == 0 for k in kernel_sizes):
        raise ValueError("series_decomp_multi requires odd kernel sizes, got "
                         f"{kernel_sizes}")
    if output_layout not in ("bldk", "kbld"):
        raise ValueError(f"unknown output_layout {output_layout!r}")

    B, L, D = x.shape
    K = len(kernel_sizes)

    dot_dtype = jnp.bfloat16 if use_bf16_matmul else jnp.float32
    a_elt = jnp.dtype(dot_dtype).itemsize
    x_elt = jnp.dtype(x.dtype).itemsize

    # (K, L, L) stacked integer-count matrices; bf16 keeps them exact.
    A_all = jnp.asarray(
        np.stack([_band_count_matrix(L, k) for k in kernel_sizes], axis=0),
        dtype=dot_dtype)

    cap = _vmem_capacity_bytes()
    Dt = _choose_d_tile(B, D, K, L, x_elt, a_elt, vmem_budget=int(0.70 * cap))
    grid = (B, D // Dt)

    est = _block_vmem_bytes(K, L, Dt, x_elt, a_elt)
    vmem_limit = int(min(0.85 * cap, max(int(est * 1.25), 32 << 20)))

    cost = pl.CostEstimate(
        flops=2 * K * L * L * B * D,
        transcendentals=0,
        bytes_accessed=(B * L * D * x_elt            # read x once
                        + 2 * K * B * L * D * x_elt  # write res + mean
                        + K * L * L * a_elt),        # read A once
    )

    kernel = functools.partial(_decomp_multi_kernel,
                               kernel_sizes=kernel_sizes, dot_dtype=dot_dtype)

    res_kbld, mean_kbld = pl.pallas_call(
        kernel,
        out_shape=(
            jax.ShapeDtypeStruct((K, B, L, D), x.dtype),
            jax.ShapeDtypeStruct((K, B, L, D), x.dtype),
        ),
        grid=grid,
        in_specs=[
            # Constant index map: A is DMA'd once and stays resident.
            pl.BlockSpec((K, L, L), lambda b, d: (0, 0, 0)),
            pl.BlockSpec((1, L, Dt), lambda b, d: (b, 0, d)),
        ],
        out_specs=(
            pl.BlockSpec((K, 1, L, Dt), lambda b, d: (0, b, 0, d)),
            pl.BlockSpec((K, 1, L, Dt), lambda b, d: (0, b, 0, d)),
        ),
        compiler_params=pltpu.CompilerParams(
            dimension_semantics=("parallel", "parallel"),
            vmem_limit_bytes=vmem_limit,
        ),
        cost_estimate=cost,
    )(A_all, x)

    if output_layout == "kbld":
        return res_kbld, mean_kbld

    # PyTorch-compatible (B, L, D, K) stacking.  This single permute is the
    # only extra HBM traffic left; callers that reduce over K should pass
    # output_layout="kbld" and skip it entirely.
    sea = jnp.transpose(res_kbld, (1, 2, 3, 0))
    moving_mean = jnp.transpose(mean_kbld, (1, 2, 3, 0))
    return sea, moving_mean


def _reference_numpy(x, kernel_sizes):
    """Pure-numpy reference mirroring the PyTorch forward exactly (f64)."""
    x = np.asarray(x, dtype=np.float64)
    B, L, D = x.shape
    res_l, mean_l = [], []
    for k in kernel_sizes:
        pad = (k - 1) // 2
        front = np.repeat(x[:, :1, :], pad, axis=1)
        end = np.repeat(x[:, -1:, :], pad, axis=1)
        xp = np.concatenate([front, x, end], axis=1)
        L_out = xp.shape[1] - k + 1
        mean = np.zeros((B, L_out, D))
        for i in range(k):
            mean += xp[:, i:i + L_out, :]
        mean /= k
        res_l.append(x[:, :L_out, :] - mean)
        mean_l.append(mean)
    return np.stack(res_l, -1), np.stack(mean_l, -1)


if __name__ == "__main__":
    # Small, module-consistent shapes: batch=2, seq_len=16, channels=8.
    B, L, D = 2, 16, 8
    kernel_sizes = (3, 5)

    key = jax.random.PRNGKey(0)
    x = jax.random.normal(key, (B, L, D), dtype=jnp.float32)

    # Default path: PyTorch-compatible (B, L, D, K) outputs.
    fn = jax.jit(functools.partial(series_decomp_multi, kernel_sizes=kernel_sizes))
    sea, moving_mean = fn(x)
    jax.block_until_ready((sea, moving_mean))

    # Fast path: kernel-native (K, B, L, D) outputs, no extra HBM pass.
    fast = jax.jit(functools.partial(series_decomp_multi, kernel_sizes=kernel_sizes,
                                     output_layout="kbld"))
    res_k, mean_k = fast(x)
    jax.block_until_ready((res_k, mean_k))

    sea_np, mean_np = _reference_numpy(np.asarray(x), kernel_sizes)
    assert sea.shape == (B, L, D, len(kernel_sizes))
    assert moving_mean.shape == (B, L, D, len(kernel_sizes))
    # bf16 MXU operands (x cast for the dot) -> ~1e-3 relative error vs. f64.
    tol = dict(rtol=2e-2, atol=2e-2)
    np.testing.assert_allclose(np.asarray(sea), sea_np, **tol)
    np.testing.assert_allclose(np.asarray(moving_mean), mean_np, **tol)
    np.testing.assert_allclose(np.asarray(res_k).transpose(1, 2, 3, 0), sea_np, **tol)
    np.testing.assert_allclose(np.asarray(mean_k).transpose(1, 2, 3, 0), mean_np, **tol)
    print("KERNEL_OK")
</pallas_src>

<mosaic_0001>
module attributes {stable_mosaic.version = 11 : i64} {
  func.func @_decomp_multi_kernel(%arg0: i32, %arg1: i32, %arg2: memref<2x16x16xbf16, #tpu.memory_space<vmem>>, %arg3: memref<1x16x8xf32, #tpu.memory_space<vmem>>, %arg4: memref<2x1x16x8xf32, #tpu.memory_space<vmem>>, %arg5: memref<2x1x16x8xf32, #tpu.memory_space<vmem>>) attributes {dimension_semantics = [#tpu.dimension_semantics<parallel>, #tpu.dimension_semantics<parallel>], iteration_bounds = array<i64: 2, 1>, scalar_prefetch = 0 : i64, scratch_operands = 0 : i64, tpu.core_type = #tpu.core_type<tc>, window_params = [{pipeline_mode = #tpu.pipeline_mode<synchronous>, transform_indices = @transform_0, window_bounds = array<i64: 2, 16, 16>}, {transform_indices = @transform_1, window_bounds = array<i64: 1, 16, 8>}, {transform_indices = @transform_2, window_bounds = array<i64: 2, 1, 16, 8>}, {transform_indices = @transform_3, window_bounds = array<i64: 2, 1, 16, 8>}]} {
    %c0 = arith.constant 0 : index
    %c0_0 = arith.constant 0 : index
    %c0_1 = arith.constant 0 : index
    %0 = vector.load %arg3[%c0, %c0_0, %c0_1] : memref<1x16x8xf32, #tpu.memory_space<vmem>>, vector<1x16x8xf32>
    %1 = vector.shape_cast %0 : vector<1x16x8xf32> to vector<16x8xf32>
    %2 = arith.truncf %1 : vector<16x8xf32> to vector<16x8xbf16>
    %c0_2 = arith.constant 0 : index
    %c0_3 = arith.constant 0 : index
    %c0_4 = arith.constant 0 : index
    %3 = vector.load %arg2[%c0_2, %c0_3, %c0_4] : memref<2x16x16xbf16, #tpu.memory_space<vmem>>, vector<1x16x16xbf16>
    %4 = vector.shape_cast %3 : vector<1x16x16xbf16> to vector<16x16xbf16>
    %cst = arith.constant dense<0.000000e+00> : vector<16x8xf32>
    %5 = tpu.matmul %4, %2, %cst {dimension_numbers = #tpu.dot_dimension_numbers<[1], [0], [0], [1], [0, 0, 1, 1], [], []>} : vector<16x16xbf16>, vector<16x8xbf16>, vector<16x8xf32> -> vector<16x8xf32>
    %cst_5 = arith.constant 0.333333343 : f32
    %6 = vector.broadcast %cst_5 : f32 to vector<16x8xf32>
    %7 = arith.mulf %5, %6 : vector<16x8xf32>
    %c0_6 = arith.constant 0 : index
    %c0_7 = arith.constant 0 : index
    %c0_8 = arith.constant 0 : index
    %c0_9 = arith.constant 0 : index
    %8 = vector.load %arg5[%c0_6, %c0_7, %c0_8, %c0_9] : memref<2x1x16x8xf32, #tpu.memory_space<vmem>>, vector<1x1x16x8xf32>
    %9 = vector.shape_cast %8 : vector<1x1x16x8xf32> to vector<16x8xf32>
    %10 = vector.shape_cast %7 : vector<16x8xf32> to vector<1x1x16x8xf32>
    tpu.vector_store %arg5[%c0_6, %c0_7, %c0_8, %c0_9], %10 {strides = array<i32>} : memref<2x1x16x8xf32, #tpu.memory_space<vmem>>, vector<1x1x16x8xf32>,
    %11 = arith.subf %1, %7 : vector<16x8xf32>
    %c0_10 = arith.constant 0 : index
    %c0_11 = arith.constant 0 : index
    %c0_12 = arith.constant 0 : index
    %c0_13 = arith.constant 0 : index
    %12 = vector.load %arg4[%c0_10, %c0_11, %c0_12, %c0_13] : memref<2x1x16x8xf32, #tpu.memory_space<vmem>>, vector<1x1x16x8xf32>
    %13 = vector.shape_cast %12 : vector<1x1x16x8xf32> to vector<16x8xf32>
    %14 = vector.shape_cast %11 : vector<16x8xf32> to vector<1x1x16x8xf32>
    tpu.vector_store %arg4[%c0_10, %c0_11, %c0_12, %c0_13], %14 {strides = array<i32>} : memref<2x1x16x8xf32, #tpu.memory_space<vmem>>, vector<1x1x16x8xf32>,
    %c1 = arith.constant 1 : index
    %c0_14 = arith.constant 0 : index
    %c0_15 = arith.constant 0 : index
    %15 = vector.load %arg2[%c1, %c0_14, %c0_15] : memref<2x16x16xbf16, #tpu.memory_space<vmem>>, vector<1x16x16xbf16>
    %16 = vector.shape_cast %15 : vector<1x16x16xbf16> to vector<16x16xbf16>
    %cst_16 = arith.constant dense<0.000000e+00> : vector<16x8xf32>
    %17 = tpu.matmul %16, %2, %cst_16 {dimension_numbers = #tpu.dot_dimension_numbers<[1], [0], [0], [1], [0, 0, 1, 1], [], []>} : vector<16x16xbf16>, vector<16x8xbf16>, vector<16x8xf32> -> vector<16x8xf32>
    %cst_17 = arith.constant 2.000000e-01 : f32
    %18 = vector.broadcast %cst_17 : f32 to vector<16x8xf32>
    %19 = arith.mulf %17, %18 : vector<16x8xf32>
    %c1_18 = arith.constant 1 : index
    %c0_19 = arith.constant 0 : index
    %c0_20 = arith.constant 0 : index
    %c0_21 = arith.constant 0 : index
    %20 = vector.load %arg5[%c1_18, %c0_19, %c0_20, %c0_21] : memref<2x1x16x8xf32, #tpu.memory_space<vmem>>, vector<1x1x16x8xf32>
    %21 = vector.shape_cast %20 : vector<1x1x16x8xf32> to vector<16x8xf32>
    %22 = vector.shape_cast %19 : vector<16x8xf32> to vector<1x1x16x8xf32>
    tpu.vector_store %arg5[%c1_18, %c0_19, %c0_20, %c0_21], %22 {strides = array<i32>} : memref<2x1x16x8xf32, #tpu.memory_space<vmem>>, vector<1x1x16x8xf32>,
    %23 = arith.subf %1, %19 : vector<16x8xf32>
    %c1_22 = arith.constant 1 : index
    %c0_23 = arith.constant 0 : index
    %c0_24 = arith.constant 0 : index
    %c0_25 = arith.constant 0 : index
    %24 = vector.load %arg4[%c1_22, %c0_23, %c0_24, %c0_25] : memref<2x1x16x8xf32, #tpu.memory_space<vmem>>, vector<1x1x16x8xf32>
    %25 = vector.shape_cast %24 : vector<1x1x16x8xf32> to vector<16x8xf32>
    %26 = vector.shape_cast %23 : vector<16x8xf32> to vector<1x1x16x8xf32>
    tpu.vector_store %arg4[%c1_22, %c0_23, %c0_24, %c0_25], %26 {strides = array<i32>} : memref<2x1x16x8xf32, #tpu.memory_space<vmem>>, vector<1x1x16x8xf32>,
    return
  }
  func.func @transform_0(%arg0: i32, %arg1: i32) -> (i32, i32, i32) {
    %c0_i32 = arith.constant 0 : i32
    %c0_i32_0 = arith.constant 0 : i32
    %c0_i32_1 = arith.constant 0 : i32
    %c0_i32_2 = arith.constant 0 : i32
    return %c0_i32, %c0_i32_0, %c0_i32_1 : i32, i32, i32
  }
  func.func @transform_1(%arg0: i32, %arg1: i32) -> (i32, i32, i32) {
    %c0_i32 = arith.constant 0 : i32
    %c0_i32_0 = arith.constant 0 : i32
    return %arg0, %c0_i32, %arg1 : i32, i32, i32
  }
  func.func @transform_2(%arg0: i32, %arg1: i32) -> (i32, i32, i32, i32) {
    %c0_i32 = arith.constant 0 : i32
    %c0_i32_0 = arith.constant 0 : i32
    %c0_i32_1 = arith.constant 0 : i32
    return %c0_i32, %arg0, %c0_i32_0, %arg1 : i32, i32, i32, i32
  }
  func.func @transform_3(%arg0: i32, %arg1: i32) -> (i32, i32, i32, i32) {
    %c0_i32 = arith.constant 0 : i32
    %c0_i32_0 = arith.constant 0 : i32
    %c0_i32_1 = arith.constant 0 : i32
    return %c0_i32, %arg0, %c0_i32_0, %arg1 : i32, i32, i32, i32
  }
}

</mosaic_0001>

<bundles_post_ra>
// kernel: series_decomp_multi.1
= control target key start
LH: loop header
LB: loop body
LE: loop exit
PB: predicated region body
PF: predicated region fallthrough
CT: control target
= control target key end

     0   :  { %s619_s12 = smov 0   ;;  %s621_s13 = smov 0   ;;  %s719_s0 = inlined_call_operand.vmem [shape: bf16[2,16,16], index: 0, kind: input, shape index: {}]   ;;  %s720_s1 = inlined_call_operand.vmem [shape: f32[2,16,8], index: 1, kind: input, shape index: {}]   ;;  %s721_s2 = inlined_call_operand.vmem [shape: f32[2,2,16,8], index: 2, kind: output, shape index: {0}]   ;;  %s722_s3 = inlined_call_operand.vmem [shape: f32[2,2,16,8], index: 3, kind: output, shape index: {1}]  }
   0x1   :  { %s623_s14 = smov 0   ;;  %s625_s15 = smov 0  }
   0x2   :  { %s627_s16 = smov 0  }
   0x3 LB: > { %s481_s17 = sadd.s32 4294967295, %s597_s16   ;;  %s26_s18 = sadd.s32 1, %s593_s15  ;;  %s597_s16 = sphi %s627_s16, %s14_s16   ;;  %s593_s15 = sphi %s625_s15, %s727_s15   ;;  %s589_s14 = sphi %s623_s14, %s726_s14   ;;  %s585_s13 = sphi %s621_s13, %s725_s13   ;;  %s581_s12 = sphi %s619_s12, %s724_s12  }
   0x4   : > { %p28_p0 = scmp.ge.s32.totalorder %s26_s18, 2  ;;  %s84_s19 = sadd.s32 1, %s585_s13 }
   0x5   : > { %p94_p1 = scmp.ne.s32.totalorder %s585_s13, %s581_s12  ;;  %p95_p2 = scmp.eq.s32.totalorder %s481_s17, 1 }
   0x6   : > { %s729_s18 = smov (%p28_p0, %s26_s18), 0  ;;  %p485_p4 = scmp.ge.s32.totalorder %s597_s16, 1 }
   0x7   : > { %p651_p3 = por %p95_p2, %p94_p1  ;;  %s79_s21 = ssub.s32 %s593_s15, %s729_s18 }
   0x8   : > { %p161_p5 = scmp.lt.s32.totalorder %s597_s16, 3  ;;  %p82_p6 = scmp.eq.s32.totalorder %s79_s21, 0 }
   0xa   : > { %p162_p7 = pnand %p485_p4, %p161_p5 }
   0xb   : > { %s660_s22 = scalar_select %p82_p6, %s585_s13, %s84_s19  }
   0xc   : > { %165 = sbr.rel (%p162_p7) target bundleno = 181 (0xb5), region = 28  ;;  %p191_p8 = scmp.lt.s32.totalorder (!%p162_p7), %s589_s14, 1 }
   0xd   : > { %s182_s5 = sand.u32 (!%p162_p7), 1, %s581_s12  }
   0xe   : > { %s486_s6 = sshll.u32 (!%p162_p7), %s182_s5, 5 }
   0xf   : > { %s674_s7 = scalar_lea.vmem (!%p162_p7), [#allocation3], %s486_s6  ;;  %s184_s8 = scalar_lea.vmem (!%p162_p7), [#allocation2], %s486_s6 }
  0x11   : > { %s192_s23 = scalar_select %p191_p8, %s589_s14, 1  ;;  %v515_v3 = vld [vmem:[%s719_s0] sm:$0xff]  ;;  %v516_v4 = vld [vmem:[%s719_s0 + $0x8] sm:$0xff]  ;;  %vm210_vm0 = vcmask 130048   ;;  %vm230_vm1 = vcmask 64512  }
  0x12   : > { %s517_s9 = sshll.u32 (%p651_p3), %s589_s14, 4 }
  0x13   : > { %s514_s24 = sshll.u32 %s192_s23, 4  ;;  %s286_s12 = scalar_lea.vmem (%p651_p3), %s721_s2, %s517_s9 }
  0x14   : > { %s198_s27 = scalar_lea.vmem %s720_s1, %s514_s24 }
  0x15   : > { %v200_v0 = vld [vmem:[%s198_s27] sm:$0xff]  ;;  %v201_v1 = vld [vmem:[%s198_s27 + $0x8] sm:$0xff] }
  0x16   : > { %v202_v2 = vpack.c.bf16 %v201_v1, %v200_v0 }
  0x18   : > { %221 = vmatpush.bf16.msra.mxu0 %v202_v2  ;;  %255 = vmatpush.bf16.msra.mxu1 %v202_v2 }
  0x1b   : > { %494 = vmatmul.msk.bf16.vlgmr.msra.gmra.mxu0 %vm210_vm0, %v515_v3  ;;  %501 = vmatmul.msk.bf16.vlgmr.msra.gmra.mxu1 %vm210_vm0, %v516_v4 }
  0x98   : > { %v223_v5 = vpop.f32.mrf.mxu0  ;;  %v257_v6 = vpop.f32.mrf.mxu1 }
  0x99   : > { %v228_v7 = vmul.f32 0.33333334, %v223_v5  ;;  %v262_v8 = vmul.f32 0.2, %v257_v6 }
  0x9b   : > { %231 = vst.msk [vmem:[%s674_s7] sm:$0xff] %vm230_vm1, %v228_v7  ;;  %v233_v9 = vsub.f32 %v200_v0, %v228_v7  ;;  %v267_v10 = vsub.f32 %v200_v0, %v262_v8 }
  0x9c   : > { %502 = vst.msk [vmem:[%s674_s7 + $0x10] sm:$0xff] %vm230_vm1, %v262_v8 }
  0x9d   : > { %235 = vst.msk [vmem:[%s184_s8] sm:$0xff] %vm230_vm1, %v233_v9 }
  0x9e   : > { %504 = vst.msk [vmem:[%s184_s8 + $0x10] sm:$0xff] %vm230_vm1, %v267_v10 }
  0xa0   : > { %v225_v11 = vpop.f32.mrf.mxu0  ;;  %v259_v12 = vpop.f32.mrf.mxu1 }
  0xa1   : > { %v229_v13 = vmul.f32 0.33333334, %v225_v11  ;;  %v263_v14 = vmul.f32 0.2, %v259_v12 }
  0xa2   : > { %282 = sbr.rel (!%p651_p3) target bundleno = 175 (0xaf), region = 32 }
  0xa3   : > { %232 = vst.msk [vmem:[%s674_s7 + $0x8] sm:$0xff] %vm230_vm1, %v229_v13  ;;  %v234_v15 = vsub.f32 %v201_v1, %v229_v13  ;;  %v268_v16 = vsub.f32 %v201_v1, %v263_v14 }
  0xa4   : > { %503 = vst.msk [vmem:[%s674_s7 + $0x18] sm:$0xff] %vm230_vm1, %v263_v14  ;;  %v321_v17 = vld [vmem:[%s184_s8] sm:$0xff] (%p651_p3) }
  0xa5   : > { %236 = vst.msk [vmem:[%s184_s8 + $0x8] sm:$0xff] %vm230_vm1, %v234_v15  ;;  %v325_v19 = vld [vmem:[%s184_s8 + $0x10] sm:$0xff] (%p651_p3) }
  0xa6   : > { %505 = vst.msk [vmem:[%s184_s8 + $0x18] sm:$0xff] %vm230_vm1, %v268_v16 }
  0xa7   : > { %322 = vst [vmem:[%s286_s12] sm:$0xff] %v321_v17 }
  0xa8   : > { %326 = vst [vmem:[%s286_s12 + $0x20] sm:$0xff] %v325_v19 }
  0xac   : > { %v323_v18 = vld [vmem:[%s184_s8 + $0x8] sm:$0xff] }
  0xad   : > { %v327_v20 = vld [vmem:[%s184_s8 + $0x18] sm:$0xff]  ;;  %324 = vst [vmem:[%s286_s12 + $0x8] sm:$0xff] %v323_v18 }
  0xae   : > { %328 = vst [vmem:[%s286_s12 + $0x28] sm:$0xff] %v327_v20 }
  0xaf PF: > { %334 = sbr.rel (!%p651_p3) target bundleno = 181 (0xb5), region = 70  ;;  %s518_s17 = sshll.u32 (%p651_p3), %s589_s14, 4  ;;  %v373_v21 = vld [vmem:[%s674_s7] sm:$0xff] (%p651_p3)  ;;  %v377_v23 = vld [vmem:[%s674_s7 + $0x10] sm:$0xff] (%p651_p3) }
  0xb0   : > { %s338_s23 = scalar_lea.vmem (%p651_p3), %s722_s3, %s518_s17 }
  0xb1   : > { %374 = vst [vmem:[%s338_s23] sm:$0xff] (%p651_p3), %v373_v21 }
  0xb2   : > { %v375_v22 = vld [vmem:[%s674_s7 + $0x8] sm:$0xff] (%p651_p3)  ;;  %378 = vst [vmem:[%s338_s23 + $0x20] sm:$0xff] (%p651_p3), %v377_v23 }
  0xb3   : > { %v379_v24 = vld [vmem:[%s674_s7 + $0x18] sm:$0xff] (%p651_p3)  ;;  %376 = vst [vmem:[%s338_s23 + $0x8] sm:$0xff] (%p651_p3), %v375_v22 }
  0xb4   : > { %380 = vst [vmem:[%s338_s23 + $0x28] sm:$0xff] %v379_v24 }
  0xb5 PF: > { %s14_s16 = sadd.s32 1, %s597_s16   ;;  %s724_s12 = smov %s585_s13 }
  0xb6   : > { %p11_p9 = scmp.ge.s32.totalorder %s14_s16, 4   ;;  %s725_s13 = smov %s660_s22 }
  0xb7   : > { %s726_s14 = smov %s593_s15  ;;  %s727_s15 = smov %s729_s18 }
  0xb8   :  { %13 = sbr.rel (!%p11_p9) target bundleno = 3 (0x3), region = 149 }

</bundles_post_ra>
